<compile_context>
chip_gen: v5e
topology: v5e:2x2
jax: 0.10.0
libtpu: 0.0.40
codegen_flags: <defaults>
</compile_context>

<pallas_src>
import math

import jax
import jax.numpy as jnp
from jax.experimental import pallas as pl
from jax.experimental.pallas import tpu as pltpu


# ----------------------------- Pallas kernel --------------------------------

def _fused_attention_kernel(xq_ref, xk_ref, xv_ref, wq_ref, wk_ref, wv_ref,
                            wo_ref, bo_ref, o_ref):
    """One program = one batch element. All intermediates stay in VMEM/vregs.

    xq/xk/xv_ref: (1, N, C)   bf16 activation tiles
    wq/wk/wv_ref: (H, C, D)   bf16 head-split projection weights (scale in wq)
    wo_ref:       (H, D, Cp)  bf16 head-split, lane-padded output-proj weight
    bo_ref:       (1, Cp)     f32 lane-padded output-proj bias
    o_ref:        (1, N, Cp)  f32 lane-dense output tile
    """
    xq = xq_ref[0]                      # (N, C) bf16
    xk = xk_ref[0]
    xv = xv_ref[0]
    H = wq_ref.shape[0]
    N, C = xq.shape

    # Broadcast activations across the head axis (cheap: new leading dim only)
    # so every GEMM below is a canonical leading-batch dot_general.
    xq_b = jnp.broadcast_to(xq, (H, N, C))
    xk_b = jnp.broadcast_to(xk, (H, N, C))
    xv_b = jnp.broadcast_to(xv, (H, N, C))

    # Head-batched projections straight into (H, N, D).  No bias (qkv_bias=False).
    # Softmax scale is already folded into wq (exact).
    q = jnp.einsum('hnc,hcd->hnd', xq_b, wq_ref[...],
                   preferred_element_type=jnp.float32)
    k = jnp.einsum('hnc,hcd->hnd', xk_b, wk_ref[...],
                   preferred_element_type=jnp.float32)
    v = jnp.einsum('hnc,hcd->hnd', xv_b, wv_ref[...],
                   preferred_element_type=jnp.float32)

    # Scores for all heads at once: (H, N, N), f32 accumulation.
    s = jnp.einsum('hnd,hmd->hnm',
                   q.astype(jnp.bfloat16), k.astype(jnp.bfloat16),
                   preferred_element_type=jnp.float32)

    # Softmax in f32: ONE max / exp / sum / reciprocal over the whole head stack.
    m = jnp.max(s, axis=-1, keepdims=True)
    p = jnp.exp(s - m)
    denom = jnp.sum(p, axis=-1, keepdims=True)
    p = p * pl.reciprocal(denom, approx=False)          # exact; EUP not the bottleneck

    # Attention-weighted values, head-batched: (H, N, D).
    ov = jnp.einsum('hnm,hmd->hnd',
                    p.astype(jnp.bfloat16), v.astype(jnp.bfloat16),
                    preferred_element_type=jnp.float32)

    # Output projection with the head merge folded into the contraction:
    # y[n, c] = sum_h sum_d ov[h, n, d] * wo[h, d, c]   (no lane concatenate).
    y = jnp.einsum('hnd,hdc->hnc',
                   ov.astype(jnp.bfloat16), wo_ref[...],
                   preferred_element_type=jnp.float32)   # (H, N, Cp)
    y = jnp.sum(y, axis=0) + bo_ref[...]                 # (N, Cp) + (1, Cp)

    # Lane-dense (Cp = multiple of 128) full-width store; proj_drop=0 -> no-op.
    o_ref[0] = y.astype(o_ref.dtype)


# ------------------------------ param prep -----------------------------------

def _prepare_params(params, num_heads):
    """One-time weight relayout: head split, transpose, scale fold, lane padding."""
    C = params["wq"].shape[0]
    D = C // num_heads
    scale = D ** (-0.5)
    C_pad = ((C + 127) // 128) * 128

    def split_head_weight(w, s=1.0):
        # PyTorch Linear weight is (C_out, C_in); forward is x @ w.T.
        # Produce w_r[h, c_in, d] = w[h*D + d, c_in] so the kernel can do
        # einsum('hnc,hcd->hnd').
        wt = jnp.transpose(w) * s                          # (C_in, C_out)
        return jnp.transpose(wt.reshape(C, num_heads, D),
                             (1, 0, 2)).astype(jnp.bfloat16)

    wq_r = split_head_weight(params["wq"], scale)          # scale folded (exact)
    wk_r = split_head_weight(params["wk"])
    wv_r = split_head_weight(params["wv"])

    # Output projection: wo_r[h, d, c_out] = wo[c_out, h*D + d], zero-padded on
    # c_out to a lane-dense multiple of 128.
    wo_t = jnp.transpose(params["wo"])                     # (C_in, C_out)
    wo_r = wo_t.reshape(num_heads, D, C)
    wo_r = jnp.pad(wo_r, ((0, 0), (0, 0), (0, C_pad - C))).astype(jnp.bfloat16)
    bo = jnp.pad(params["bo"], (0, C_pad - C)).reshape(1, C_pad).astype(jnp.float32)
    return wq_r, wk_r, wv_r, wo_r, bo, C_pad


# ------------------------------- wrapper -------------------------------------

def attention_forward(q_in, k_in, v_in, params, num_heads):
    """q_in/k_in/v_in: (B, N, C) f32. params hold PyTorch-style (C_out, C_in) weights."""
    B, N, C = q_in.shape
    wq_r, wk_r, wv_r, wo_r, bo, C_pad = _prepare_params(params, num_heads)

    # bf16 MXU operands; f32 accumulation and softmax inside the kernel.
    qb = q_in.astype(jnp.bfloat16)
    kb = k_in.astype(jnp.bfloat16)
    vb = v_in.astype(jnp.bfloat16)

    seq_spec = pl.BlockSpec((1, N, C), lambda b: (b, 0, 0))

    def full_spec(shape):
        return pl.BlockSpec(shape, lambda b, _n=len(shape): (0,) * _n)

    out = pl.pallas_call(
        _fused_attention_kernel,
        out_shape=jax.ShapeDtypeStruct((B, N, C_pad), q_in.dtype),
        grid=(B,),
        in_specs=[seq_spec, seq_spec, seq_spec,
                  full_spec(wq_r.shape), full_spec(wk_r.shape),
                  full_spec(wv_r.shape), full_spec(wo_r.shape),
                  full_spec(bo.shape)],
        out_specs=pl.BlockSpec((1, N, C_pad), lambda b: (b, 0, 0)),
        compiler_params=pltpu.CompilerParams(
            dimension_semantics=("parallel",)),
    )(qb, kb, vb, wq_r, wk_r, wv_r, wo_r, bo)

    # Drop the lane padding (cheap XLA slice outside the kernel).
    return out[..., :C]


# ------------------------------ reference ------------------------------------

def attention_reference(q_in, k_in, v_in, params, num_heads):
    B, N, C = q_in.shape
    D = C // num_heads
    scale = D ** (-0.5)
    q = (q_in @ params["wq"].T).reshape(B, N, num_heads, D).transpose(0, 2, 1, 3)
    k = (k_in @ params["wk"].T).reshape(B, N, num_heads, D).transpose(0, 2, 1, 3)
    v = (v_in @ params["wv"].T).reshape(B, N, num_heads, D).transpose(0, 2, 1, 3)
    s = jnp.einsum("bhnd,bhmd->bhnm", q, k) * scale
    p = jax.nn.softmax(s, axis=-1)
    x = jnp.einsum("bhnm,bhmd->bhnd", p, v)
    x = x.transpose(0, 2, 1, 3).reshape(B, N, C)
    return x @ params["wo"].T + params["bo"]


# -------------------------------- main ----------------------------------------

if __name__ == "__main__":
    B, N, C = 2, 8, 32
    NUM_HEADS = 8  # head_dim = 4

    key = jax.random.PRNGKey(0)
    k_q, k_k, k_v, k_wq, k_wk, k_wv, k_wo, k_bo = jax.random.split(key, 8)

    q_in = jax.random.normal(k_q, (B, N, C), jnp.float32)
    k_in = jax.random.normal(k_k, (B, N, C), jnp.float32)
    v_in = jax.random.normal(k_v, (B, N, C), jnp.float32)

    bound = 1.0 / math.sqrt(C)  # PyTorch nn.Linear default init range
    params = {
        "wq": jax.random.uniform(k_wq, (C, C), jnp.float32, -bound, bound),
        "wk": jax.random.uniform(k_wk, (C, C), jnp.float32, -bound, bound),
        "wv": jax.random.uniform(k_wv, (C, C), jnp.float32, -bound, bound),
        "wo": jax.random.uniform(k_wo, (C, C), jnp.float32, -bound, bound),
        "bo": jax.random.uniform(k_bo, (C,), jnp.float32, -bound, bound),
    }

    out = attention_forward(q_in, k_in, v_in, params, NUM_HEADS)
    out = jax.block_until_ready(out)

    ref = attention_reference(q_in, k_in, v_in, params, NUM_HEADS)
    assert out.shape == (B, N, C)
    # Tolerance accommodates bf16 MXU operands (f32 reference).
    assert jnp.allclose(out, ref, atol=2e-2, rtol=2e-2), "mismatch vs reference"

    print("KERNEL_OK")
</pallas_src>

<mosaic_0001>
module attributes {stable_mosaic.version = 11 : i64} {
  func.func @_fused_attention_kernel(%arg0: i32, %arg1: memref<1x8x32xbf16, #tpu.memory_space<vmem>>, %arg2: memref<1x8x32xbf16, #tpu.memory_space<vmem>>, %arg3: memref<1x8x32xbf16, #tpu.memory_space<vmem>>, %arg4: memref<8x32x4xbf16, #tpu.memory_space<vmem>>, %arg5: memref<8x32x4xbf16, #tpu.memory_space<vmem>>, %arg6: memref<8x32x4xbf16, #tpu.memory_space<vmem>>, %arg7: memref<8x4x128xbf16, #tpu.memory_space<vmem>>, %arg8: memref<1x128xf32, #tpu.memory_space<vmem>>, %arg9: memref<1x8x128xf32, #tpu.memory_space<vmem>>) attributes {dimension_semantics = [#tpu.dimension_semantics<parallel>], iteration_bounds = array<i64: 2>, scalar_prefetch = 0 : i64, scratch_operands = 0 : i64, tpu.core_type = #tpu.core_type<tc>, window_params = [{transform_indices = @transform_0, window_bounds = array<i64: 1, 8, 32>}, {transform_indices = @transform_1, window_bounds = array<i64: 1, 8, 32>}, {transform_indices = @transform_2, window_bounds = array<i64: 1, 8, 32>}, {pipeline_mode = #tpu.pipeline_mode<synchronous>, transform_indices = @transform_3, window_bounds = array<i64: 8, 32, 4>}, {pipeline_mode = #tpu.pipeline_mode<synchronous>, transform_indices = @transform_4, window_bounds = array<i64: 8, 32, 4>}, {pipeline_mode = #tpu.pipeline_mode<synchronous>, transform_indices = @transform_5, window_bounds = array<i64: 8, 32, 4>}, {pipeline_mode = #tpu.pipeline_mode<synchronous>, transform_indices = @transform_6, window_bounds = array<i64: 8, 4, 128>}, {pipeline_mode = #tpu.pipeline_mode<synchronous>, transform_indices = @transform_7, window_bounds = array<i64: 1, 128>}, {transform_indices = @transform_8, window_bounds = array<i64: 1, 8, 128>}]} {
    %c0 = arith.constant 0 : index
    %c0_0 = arith.constant 0 : index
    %c0_1 = arith.constant 0 : index
    %0 = vector.load %arg1[%c0, %c0_0, %c0_1] : memref<1x8x32xbf16, #tpu.memory_space<vmem>>, vector<1x8x32xbf16>
    %1 = vector.shape_cast %0 : vector<1x8x32xbf16> to vector<8x32xbf16>
    %c0_2 = arith.constant 0 : index
    %c0_3 = arith.constant 0 : index
    %c0_4 = arith.constant 0 : index
    %2 = vector.load %arg2[%c0_2, %c0_3, %c0_4] : memref<1x8x32xbf16, #tpu.memory_space<vmem>>, vector<1x8x32xbf16>
    %3 = vector.shape_cast %2 : vector<1x8x32xbf16> to vector<8x32xbf16>
    %c0_5 = arith.constant 0 : index
    %c0_6 = arith.constant 0 : index
    %c0_7 = arith.constant 0 : index
    %4 = vector.load %arg3[%c0_5, %c0_6, %c0_7] : memref<1x8x32xbf16, #tpu.memory_space<vmem>>, vector<1x8x32xbf16>
    %5 = vector.shape_cast %4 : vector<1x8x32xbf16> to vector<8x32xbf16>
    %6 = vector.shape_cast %1 : vector<8x32xbf16> to vector<1x8x32xbf16>
    %7 = vector.broadcast %6 : vector<1x8x32xbf16> to vector<8x8x32xbf16>
    %8 = vector.shape_cast %3 : vector<8x32xbf16> to vector<1x8x32xbf16>
    %9 = vector.broadcast %8 : vector<1x8x32xbf16> to vector<8x8x32xbf16>
    %10 = vector.shape_cast %5 : vector<8x32xbf16> to vector<1x8x32xbf16>
    %11 = vector.broadcast %10 : vector<1x8x32xbf16> to vector<8x8x32xbf16>
    %c0_8 = arith.constant 0 : index
    %c0_9 = arith.constant 0 : index
    %c0_10 = arith.constant 0 : index
    %12 = vector.load %arg4[%c0_8, %c0_9, %c0_10] : memref<8x32x4xbf16, #tpu.memory_space<vmem>>, vector<8x32x4xbf16>
    "tpu.trace_start"() <{level = 10 : i32, message = "hnc,hcd->hnd"}> : () -> ()
    %cst = arith.constant dense<0.000000e+00> : vector<8x8x4xf32>
    %13 = tpu.matmul %7, %12, %cst {dimension_numbers = #tpu.dot_dimension_numbers<[2], [1], [1], [2], [0, 0, 0, 1, 1, 2], [0], [0]>} : vector<8x8x32xbf16>, vector<8x32x4xbf16>, vector<8x8x4xf32> -> vector<8x8x4xf32>
    "tpu.trace_stop"() : () -> ()
    %c0_11 = arith.constant 0 : index
    %c0_12 = arith.constant 0 : index
    %c0_13 = arith.constant 0 : index
    %14 = vector.load %arg5[%c0_11, %c0_12, %c0_13] : memref<8x32x4xbf16, #tpu.memory_space<vmem>>, vector<8x32x4xbf16>
    "tpu.trace_start"() <{level = 10 : i32, message = "hnc,hcd->hnd"}> : () -> ()
    %cst_14 = arith.constant dense<0.000000e+00> : vector<8x8x4xf32>
    %15 = tpu.matmul %9, %14, %cst_14 {dimension_numbers = #tpu.dot_dimension_numbers<[2], [1], [1], [2], [0, 0, 0, 1, 1, 2], [0], [0]>} : vector<8x8x32xbf16>, vector<8x32x4xbf16>, vector<8x8x4xf32> -> vector<8x8x4xf32>
    "tpu.trace_stop"() : () -> ()
    %c0_15 = arith.constant 0 : index
    %c0_16 = arith.constant 0 : index
    %c0_17 = arith.constant 0 : index
    %16 = vector.load %arg6[%c0_15, %c0_16, %c0_17] : memref<8x32x4xbf16, #tpu.memory_space<vmem>>, vector<8x32x4xbf16>
    "tpu.trace_start"() <{level = 10 : i32, message = "hnc,hcd->hnd"}> : () -> ()
    %cst_18 = arith.constant dense<0.000000e+00> : vector<8x8x4xf32>
    %17 = tpu.matmul %11, %16, %cst_18 {dimension_numbers = #tpu.dot_dimension_numbers<[2], [1], [1], [2], [0, 0, 0, 1, 1, 2], [0], [0]>} : vector<8x8x32xbf16>, vector<8x32x4xbf16>, vector<8x8x4xf32> -> vector<8x8x4xf32>
    "tpu.trace_stop"() : () -> ()
    %18 = arith.truncf %13 : vector<8x8x4xf32> to vector<8x8x4xbf16>
    %19 = arith.truncf %15 : vector<8x8x4xf32> to vector<8x8x4xbf16>
    "tpu.trace_start"() <{level = 10 : i32, message = "hnd,hmd->hnm"}> : () -> ()
    %cst_19 = arith.constant dense<0.000000e+00> : vector<8x8x8xf32>
    %20 = tpu.matmul %18, %19, %cst_19 {dimension_numbers = #tpu.dot_dimension_numbers<[2], [2], [1], [1], [0, 0, 0, 1, 1, 1], [0], [0]>} : vector<8x8x4xbf16>, vector<8x8x4xbf16>, vector<8x8x8xf32> -> vector<8x8x8xf32>
    "tpu.trace_stop"() : () -> ()
    %cst_20 = arith.constant dense<0xFF800000> : vector<8x8xf32>
    %21 = vector.multi_reduction <maximumf>, %20, %cst_20 [2] : vector<8x8x8xf32> to vector<8x8xf32>
    %22 = vector.shape_cast %21 : vector<8x8xf32> to vector<8x8x1xf32>
    %23 = vector.broadcast %22 : vector<8x8x1xf32> to vector<8x8x8xf32>
    %24 = arith.subf %20, %23 : vector<8x8x8xf32>
    %25 = math.exp %24 : vector<8x8x8xf32>
    %cst_21 = arith.constant dense<0.000000e+00> : vector<8x8xf32>
    %26 = vector.multi_reduction <add>, %25, %cst_21 [2] : vector<8x8x8xf32> to vector<8x8xf32>
    %27 = vector.shape_cast %26 : vector<8x8xf32> to vector<8x8x1xf32>
    %28 = tpu.reciprocal %27 : vector<8x8x1xf32> -> vector<8x8x1xf32>
    %29 = vector.broadcast %28 : vector<8x8x1xf32> to vector<8x8x8xf32>
    %30 = arith.mulf %25, %29 : vector<8x8x8xf32>
    %31 = arith.truncf %30 : vector<8x8x8xf32> to vector<8x8x8xbf16>
    %32 = arith.truncf %17 : vector<8x8x4xf32> to vector<8x8x4xbf16>
    "tpu.trace_start"() <{level = 10 : i32, message = "hnm,hmd->hnd"}> : () -> ()
    %cst_22 = arith.constant dense<0.000000e+00> : vector<8x8x4xf32>
    %33 = tpu.matmul %31, %32, %cst_22 {dimension_numbers = #tpu.dot_dimension_numbers<[2], [1], [1], [2], [0, 0, 0, 1, 1, 2], [0], [0]>} : vector<8x8x8xbf16>, vector<8x8x4xbf16>, vector<8x8x4xf32> -> vector<8x8x4xf32>
    "tpu.trace_stop"() : () -> ()
    %34 = arith.truncf %33 : vector<8x8x4xf32> to vector<8x8x4xbf16>
    %c0_23 = arith.constant 0 : index
    %c0_24 = arith.constant 0 : index
    %c0_25 = arith.constant 0 : index
    %35 = vector.load %arg7[%c0_23, %c0_24, %c0_25] : memref<8x4x128xbf16, #tpu.memory_space<vmem>>, vector<8x4x128xbf16>
    "tpu.trace_start"() <{level = 10 : i32, message = "hnd,hdc->hnc"}> : () -> ()
    %cst_26 = arith.constant dense<0.000000e+00> : vector<8x8x128xf32>
    %36 = tpu.matmul %34, %35, %cst_26 {dimension_numbers = #tpu.dot_dimension_numbers<[2], [1], [1], [2], [0, 0, 0, 1, 1, 2], [0], [0]>} : vector<8x8x4xbf16>, vector<8x4x128xbf16>, vector<8x8x128xf32> -> vector<8x8x128xf32>
    "tpu.trace_stop"() : () -> ()
    %cst_27 = arith.constant dense<0.000000e+00> : vector<8x128xf32>
    %37 = vector.multi_reduction <add>, %36, %cst_27 [0] : vector<8x8x128xf32> to vector<8x128xf32>
    %c0_28 = arith.constant 0 : index
    %c0_29 = arith.constant 0 : index
    %38 = vector.load %arg8[%c0_28, %c0_29] : memref<1x128xf32, #tpu.memory_space<vmem>>, vector<1x128xf32>
    %39 = vector.broadcast %38 : vector<1x128xf32> to vector<8x128xf32>
    %40 = arith.addf %37, %39 : vector<8x128xf32>
    %c0_30 = arith.constant 0 : index
    %c0_31 = arith.constant 0 : index
    %c0_32 = arith.constant 0 : index
    %41 = vector.load %arg9[%c0_30, %c0_31, %c0_32] : memref<1x8x128xf32, #tpu.memory_space<vmem>>, vector<1x8x128xf32>
    %42 = vector.shape_cast %41 : vector<1x8x128xf32> to vector<8x128xf32>
    %43 = vector.shape_cast %40 : vector<8x128xf32> to vector<1x8x128xf32>
    tpu.vector_store %arg9[%c0_30, %c0_31, %c0_32], %43 {strides = array<i32>} : memref<1x8x128xf32, #tpu.memory_space<vmem>>, vector<1x8x128xf32>,
    return
  }
  func.func @transform_0(%arg0: i32) -> (i32, i32, i32) {
    %c0_i32 = arith.constant 0 : i32
    %c0_i32_0 = arith.constant 0 : i32
    %c0_i32_1 = arith.constant 0 : i32
    return %arg0, %c0_i32, %c0_i32_0 : i32, i32, i32
  }
  func.func @transform_1(%arg0: i32) -> (i32, i32, i32) {
    %c0_i32 = arith.constant 0 : i32
    %c0_i32_0 = arith.constant 0 : i32
    %c0_i32_1 = arith.constant 0 : i32
    return %arg0, %c0_i32, %c0_i32_0 : i32, i32, i32
  }
  func.func @transform_2(%arg0: i32) -> (i32, i32, i32) {
    %c0_i32 = arith.constant 0 : i32
    %c0_i32_0 = arith.constant 0 : i32
    %c0_i32_1 = arith.constant 0 : i32
    return %arg0, %c0_i32, %c0_i32_0 : i32, i32, i32
  }
  func.func @transform_3(%arg0: i32) -> (i32, i32, i32) {
    %c0_i32 = arith.constant 0 : i32
    %c0_i32_0 = arith.constant 0 : i32
    %c0_i32_1 = arith.constant 0 : i32
    %c0_i32_2 = arith.constant 0 : i32
    return %c0_i32, %c0_i32_0, %c0_i32_1 : i32, i32, i32
  }
  func.func @transform_4(%arg0: i32) -> (i32, i32, i32) {
    %c0_i32 = arith.constant 0 : i32
    %c0_i32_0 = arith.constant 0 : i32
    %c0_i32_1 = arith.constant 0 : i32
    %c0_i32_2 = arith.constant 0 : i32
    return %c0_i32, %c0_i32_0, %c0_i32_1 : i32, i32, i32
  }
  func.func @transform_5(%arg0: i32) -> (i32, i32, i32) {
    %c0_i32 = arith.constant 0 : i32
    %c0_i32_0 = arith.constant 0 : i32
    %c0_i32_1 = arith.constant 0 : i32
    %c0_i32_2 = arith.constant 0 : i32
    return %c0_i32, %c0_i32_0, %c0_i32_1 : i32, i32, i32
  }
  func.func @transform_6(%arg0: i32) -> (i32, i32, i32) {
    %c0_i32 = arith.constant 0 : i32
    %c0_i32_0 = arith.constant 0 : i32
    %c0_i32_1 = arith.constant 0 : i32
    %c0_i32_2 = arith.constant 0 : i32
    return %c0_i32, %c0_i32_0, %c0_i32_1 : i32, i32, i32
  }
  func.func @transform_7(%arg0: i32) -> (i32, i32) {
    %c0_i32 = arith.constant 0 : i32
    %c0_i32_0 = arith.constant 0 : i32
    %c0_i32_1 = arith.constant 0 : i32
    return %c0_i32, %c0_i32_0 : i32, i32
  }
  func.func @transform_8(%arg0: i32) -> (i32, i32, i32) {
    %c0_i32 = arith.constant 0 : i32
    %c0_i32_0 = arith.constant 0 : i32
    %c0_i32_1 = arith.constant 0 : i32
    return %arg0, %c0_i32, %c0_i32_0 : i32, i32, i32
  }
}

</mosaic_0001>

<bundles_post_ra>
// kernel: tpu_custom_call.1
= control target key start
LH: loop header
LB: loop body
LE: loop exit
PB: predicated region body
PF: predicated region fallthrough
CT: control target
= control target key end

     0   :  { %13 = vsyncpa [#allocation3], 0  ;;  %s2753_s0 = inlined_call_operand.vmem [shape: bf16[2,8,32], index: 0, kind: input, shape index: {}]   ;;  %s2754_s1 = inlined_call_operand.vmem [shape: bf16[2,8,32], index: 1, kind: input, shape index: {}]   ;;  %s2755_s2 = inlined_call_operand.vmem [shape: bf16[2,8,32], index: 2, kind: input, shape index: {}]   ;;  %s2756_s3 = inlined_call_operand.vmem [shape: bf16[8,32,4], index: 3, kind: input, shape index: {}]   ;;  %s2757_s4 = inlined_call_operand.vmem [shape: bf16[8,32,4], index: 4, kind: input, shape index: {}]   ;;  %s2758_s5 = inlined_call_operand.vmem [shape: bf16[8,32,4], index: 5, kind: input, shape index: {}]   ;;  %s2759_s6 = inlined_call_operand.vmem [shape: bf16[8,4,128], index: 6, kind: input, shape index: {}]   ;;  %s2760_s7 = inlined_call_operand.vmem [shape: f32[1,128], index: 7, kind: input, shape index: {}]   ;;  %s2761_s8 = inlined_call_operand.hbm [shape: f32[2,8,128], index: 8, kind: output, shape index: {}]  }
   0x1   :  { %15 = vsyncpa [#allocation3 + $0x1], 0  ;;  %s2338_s27 = smov 0   ;;  %s2340_s28 = smov 0  }
   0x2   :  { %s2342_s29 = smov 0   ;;  %s2344_s30 = smov 0  }
   0x3 LB: > { %s2359_s9 = sadd.s32 4294967295, %s2291_s30   ;;  %s1857_s10 = sadd.s32 4294967294, %s2291_s30   ;;  %s2291_s30 = sphi %s2344_s30, %s2767_s30   ;;  %s2287_s29 = sphi %s2342_s29, %s2766_s29   ;;  %s2283_s28 = sphi %s2340_s28, %s2765_s28   ;;  %s2279_s27 = sphi %s2338_s27, %s2764_s27  }
   0x4   : > { %s2363_s11 = sadd.s32 1, %s2291_s30   ;;  %s211_s12 = sadd.s32 1, %s2287_s29 }
   0x5   : > { %s208_s13 = ssub.s32 %s2291_s30, %s2363_s11  ;;  %p221_p0 = scmp.ne.s32.totalorder %s2287_s29, %s2283_s28 }
   0x6   : > { %p209_p1 = scmp.eq.s32.totalorder %s208_s13, 0  ;;  %p222_p2 = scmp.eq.s32.totalorder %s2359_s9, 1 }
   0x7   : > { %p227_p3 = scmp.ne.s32.totalorder %s2283_s28, %s2279_s27  ;;  %p228_p4 = scmp.eq.s32.totalorder %s1857_s10, 1 }
   0x8   : > { %s2374_s14 = scalar_select %p209_p1, %s2287_s29, %s211_s12  }
   0x9   : > { %p2376_p5 = por %p222_p2, %p221_p0  ;;  %p2380_p6 = por %p228_p4, %p227_p3 }
   0xa   : > { %p1860_p7 = scmp.ge.s32.totalorder %s2291_s30, 1  ;;  %p282_p8 = scmp.lt.s32.totalorder %s2291_s30, 3 }
   0xc   : > { %p283_p9 = pnand %p1860_p7, %p282_p8 }
   0xd   : > { %p323_p10 = scmp.lt.s32.totalorder (!%p283_p9), %s2359_s9, 1  ;;  %s2106_s17 = sshll.u32 (!%p283_p9), %s2359_s9, 3 }
   0xe   : > { %286 = sbr.rel (%p283_p9) target bundleno = 900 (0x384), region = 52  ;;  %s2249_s19 = scalar_lea.hbm (!%p283_p9), %s2761_s8, 16 }
  0x13   : > { %v2110_v0 = vld [vmem:[%s2756_s3 + $0x8] sm:$0xff]  ;;  %v2112_v1 = vld [vmem:[%s2756_s3 + $0x18] sm:$0xff]  ;;  %v2109_v4 = vld [vmem:[%s2756_s3] sm:$0xff]  ;;  %s324_s13 = scalar_select %p323_p10, %s2359_s9, 1  ;;  %vm383_vm0 = vcmask 261120   ;;  %vm1061_vm1 = vcmask 31744  }
  0x14   : > { %v2114_v2 = vld [vmem:[%s2756_s3 + $0x28] sm:$0xff]  ;;  %v2116_v3 = vld [vmem:[%s2756_s3 + $0x38] sm:$0xff]  ;;  %393 = vmatpush.bf16.msra.mxu0 %v2110_v0  ;;  %418 = vmatpush.bf16.msra.mxu1 %v2112_v1  ;;  %v2111_v5 = vld [vmem:[%s2756_s3 + $0x10] sm:$0xff]  ;;  %vm1426_vm2 = vcmask 1043456   ;;  %vm1214_vm3 = vcmask 64512  }
  0x15   : > { %443 = vmatpush.bf16.msra.mxu2 %v2114_v2  ;;  %468 = vmatpush.bf16.msra.mxu3 %v2116_v3  ;;  %v2113_v6 = vld [vmem:[%s2756_s3 + $0x20] sm:$0xff]  ;;  %v2115_v7 = vld [vmem:[%s2756_s3 + $0x30] sm:$0xff]  ;;  %s2412_s21 = sshll.u32 %s324_s13, 2  ;;  %v2118_v8 = vld [vmem:[%s2756_s3 + $0x48] sm:$0xff] }
  0x16   : > { %v2120_v9 = vld [vmem:[%s2756_s3 + $0x58] sm:$0xff]  ;;  %s326_s12 = scalar_lea.vmem %s2753_s0, %s2412_s21  ;;  %v2122_v11 = vld [vmem:[%s2756_s3 + $0x68] sm:$0xff]  ;;  %v2117_v13 = vld [vmem:[%s2756_s3 + $0x40] sm:$0xff]  ;;  %s330_s10 = scalar_lea.vmem %s2754_s1, %s2412_s21 }
  0x17   : > { %v336_v10 = vld [vmem:[%s326_s12] sm:$0xf]  ;;  %v2124_v12 = vld [vmem:[%s2756_s3 + $0x78] sm:$0xff]  ;;  %v2119_v14 = vld [vmem:[%s2756_s3 + $0x50] sm:$0xff]  ;;  %s334_s24 = scalar_lea.vmem %s2755_s2, %s2412_s21  ;;  %s320_s12 = sand.u32 1, %s2283_s28  }
  0x18   : > { %394 = vmatpush.bf16.msra.mxu0 %v2109_v4  ;;  %419 = vmatpush.bf16.msra.mxu1 %v2111_v5  ;;  %v2126_v15 = vld [vmem:[%s2757_s4 + $0x8] sm:$0xff]  ;;  %v2128_v16 = vld [vmem:[%s2757_s4 + $0x18] sm:$0xff]  ;;  %v2121_v17 = vld [vmem:[%s2756_s3 + $0x60] sm:$0xff]  ;;  %s1861_s13 = sshll.u32 %s320_s12, 3  ;;  %s1769_s21 = scalar_lea.hbm %s2761_s8, %s2106_s17 }
  0x19   : > { %444 = vmatpush.bf16.msra.mxu2 %v2113_v6  ;;  %469 = vmatpush.bf16.msra.mxu3 %v2115_v7  ;;  %v2123_v18 = vld [vmem:[%s2756_s3 + $0x70] sm:$0xff]  ;;  %v2130_v19 = vld [vmem:[%s2757_s4 + $0x28] sm:$0xff]  ;;  %v2132_v20 = vld [vmem:[%s2757_s4 + $0x38] sm:$0xff]  ;;  %s322_s23 = scalar_lea.vmem [#allocation2], %s1861_s13  ;;  %s1773_s25 = sshll.u32 %s1769_s21, 4  ;;  %s1774_s25 = int_to_ptr.hbm [resolvable:$true] %s1773_s25 }
  0x1a   : > { %v2125_v21 = vld [vmem:[%s2757_s4] sm:$0xff]  ;;  %v2127_v22 = vld [vmem:[%s2757_s4 + $0x10] sm:$0xff]  ;;  %v2134_v25 = vld [vmem:[%s2757_s4 + $0x48] sm:$0xff]  ;;  %s1759_s9 = scalar_lea.sflag [#allocation3], %s320_s12  ;;  %s2243_s26 = sshra.s32 %s1774_s25, 4  ;;  %s2244_s26 = int_to_ptr.hbm [resolvable:$true] %s2243_s26 }
  0x1b   : > { %1873 = vmatmul.msk.bf16.vlgmr.msra.gmra.mxu0 %vm383_vm0, %v336_v10  ;;  %1882 = vmatmul.msk.bf16.vlgmr.msra.gmra.mxu1 %vm383_vm0, %v336_v10  ;;  %v2129_v23 = vld [vmem:[%s2757_s4 + $0x20] sm:$0xff]  ;;  %v2131_v24 = vld [vmem:[%s2757_s4 + $0x30] sm:$0xff]  ;;  %v2136_v26 = vld [vmem:[%s2757_s4 + $0x58] sm:$0xff]  ;;  %p2250_p0 = scmp.lt.s32.totalorder %s2244_s26, %s2761_s8 }
  0x1c   : > { %493 = vmatpush.bf16.msrb.mxu0 %v2118_v8  ;;  %518 = vmatpush.bf16.msrb.mxu1 %v2120_v9  ;;  %v2138_v27 = vld [vmem:[%s2757_s4 + $0x68] sm:$0xff]  ;;  %v2140_v28 = vld [vmem:[%s2757_s4 + $0x78] sm:$0xff]  ;;  %v2133_v29 = vld [vmem:[%s2757_s4 + $0x40] sm:$0xff] }
  0x1d   : > { %1891 = vmatmul.msk.bf16.vlgmr.msra.gmra.mxu2 %vm383_vm0, %v336_v10  ;;  %1900 = vmatmul.msk.bf16.vlgmr.msra.gmra.mxu3 %vm383_vm0, %v336_v10  ;;  %v2135_v30 = vld [vmem:[%s2757_s4 + $0x50] sm:$0xff]  ;;  %v2137_v31 = vld [vmem:[%s2757_s4 + $0x60] sm:$0xff]  ;;  %v2142_v34 = vld [vmem:[%s2758_s5 + $0x8] sm:$0xff] }
  0x1e   : > { %543 = vmatpush.bf16.msrb.mxu2 %v2122_v11  ;;  %568 = vmatpush.bf16.msrb.mxu3 %v2124_v12  ;;  %v2139_v32 = vld [vmem:[%s2757_s4 + $0x70] sm:$0xff]  ;;  %v337_v33 = vld [vmem:[%s330_s10] sm:$0xf]  ;;  %v2144_v35 = vld [vmem:[%s2758_s5 + $0x18] sm:$0xff]  ;;  %s2245_s10 = scalar_lea.hbm %s2244_s26, 8 }
  0x1f   : > { %v2146_v36 = vld [vmem:[%s2758_s5 + $0x28] sm:$0xff]  ;;  %v2145_v37 = vld [vmem:[%s2758_s5 + $0x20] sm:$0xff]  ;;  %v2143_v39 = vld [vmem:[%s2758_s5 + $0x10] sm:$0xff]  ;;  %p2246_p11 = scmp.ne.s32.totalorder %s2244_s26, %s2245_s10  ;;  %p2251_p1 = scmp.lt.s32.totalorder %s2249_s19, %s2245_s10 }
  0x20   : > { %494 = vmatpush.bf16.msrb.mxu0 %v2117_v13  ;;  %519 = vmatpush.bf16.msrb.mxu1 %v2119_v14  ;;  %v2141_v38 = vld [vmem:[%s2758_s5] sm:$0xff]  ;;  %v2148_v40 = vld [vmem:[%s2758_s5 + $0x38] sm:$0xff]  ;;  %v2147_v42 = vld [vmem:[%s2758_s5 + $0x30] sm:$0xff] }
  0x21   : > { %v338_v41 = vld [vmem:[%s334_s24] sm:$0xf]  ;;  %v2150_v43 = vld [vmem:[%s2758_s5 + $0x48] sm:$0xff]  ;;  %v2152_v44 = vld [vmem:[%s2758_s5 + $0x58] sm:$0xff]  ;;  %s1771_s24 = sshll.u32 %s322_s23, 4  ;;  %p2247_p12 = pnand %p2246_p11, %p2376_p5  ;;  %s1772_s24 = int_to_ptr.vmem [resolvable:$true] %s1771_s24 }
  0x22   : > { %544 = vmatpush.bf16.msrb.mxu2 %v2121_v17  ;;  %569 = vmatpush.bf16.msrb.mxu3 %v2123_v18  ;;  %v2154_v45 = vld [vmem:[%s2758_s5 + $0x68] sm:$0xff]  ;;  %v2153_v46 = vld [vmem:[%s2758_s5 + $0x60] sm:$0xff]  ;;  %v2151_v48 = vld [vmem:[%s2758_s5 + $0x50] sm:$0xff]  ;;  %p2252_p2 = por %p2251_p1, %p2250_p0 }
  0x23   : > { %v2149_v47 = vld [vmem:[%s2758_s5 + $0x40] sm:$0xff]  ;;  %v2156_v49 = vld [vmem:[%s2758_s5 + $0x78] sm:$0xff]  ;;  %v2155_v50 = vld [vmem:[%s2758_s5 + $0x70] sm:$0xff]  ;;  %p2248_p13 = pneg %p2247_p12 }
  0x24   : > { %628 = vmatpush.bf16.msra.mxu0 %v2126_v15  ;;  %653 = vmatpush.bf16.msra.mxu1 %v2128_v16 }
  0x25   : > { %p2253_p3 = pnand %p2252_p2, %p2248_p13 }
  0x26   : > { %678 = vmatpush.bf16.msra.mxu2 %v2130_v19  ;;  %703 = vmatpush.bf16.msra.mxu3 %v2132_v20 }
  0x28   : > { %629 = vmatpush.bf16.msra.mxu0 %v2125_v21  ;;  %654 = vmatpush.bf16.msra.mxu1 %v2127_v22 }
  0x2a   : > { %679 = vmatpush.bf16.msra.mxu2 %v2129_v23  ;;  %704 = vmatpush.bf16.msra.mxu3 %v2131_v24 }
  0x2b   : > { %1909 = vmatmul.msk.bf16.vlgmr.msrb.gmra.mxu0 %vm383_vm0, %v336_v10  ;;  %1918 = vmatmul.msk.bf16.vlgmr.msrb.gmra.mxu1 %vm383_vm0, %v336_v10 }
  0x2c   : > { %728 = vmatpush.bf16.msrb.mxu0 %v2134_v25  ;;  %753 = vmatpush.bf16.msrb.mxu1 %v2136_v26 }
  0x2d   : > { %1927 = vmatmul.msk.bf16.vlgmr.msrb.gmra.mxu2 %vm383_vm0, %v336_v10  ;;  %1936 = vmatmul.msk.bf16.vlgmr.msrb.gmra.mxu3 %vm383_vm0, %v336_v10 }
  0x2e   : > { %778 = vmatpush.bf16.msrb.mxu2 %v2138_v27  ;;  %803 = vmatpush.bf16.msrb.mxu3 %v2140_v28 }
  0x30   : > { %729 = vmatpush.bf16.msrb.mxu0 %v2133_v29  ;;  %754 = vmatpush.bf16.msrb.mxu1 %v2135_v30 }
  0x32   : > { %779 = vmatpush.bf16.msrb.mxu2 %v2137_v31  ;;  %804 = vmatpush.bf16.msrb.mxu3 %v2139_v32 }
  0x3b   : > { %1945 = vmatmul.msk.bf16.vlgmr.msra.gmra.mxu0 %vm383_vm0, %v337_v33  ;;  %1954 = vmatmul.msk.bf16.vlgmr.msra.gmra.mxu1 %vm383_vm0, %v337_v33 }
  0x3c   : > { %863 = vmatpush.bf16.msra.mxu0 %v2142_v34  ;;  %888 = vmatpush.bf16.msra.mxu1 %v2144_v35 }
  0x3d   : > { %1963 = vmatmul.msk.bf16.vlgmr.msra.gmra.mxu2 %vm383_vm0, %v337_v33  ;;  %1972 = vmatmul.msk.bf16.vlgmr.msra.gmra.mxu3 %vm383_vm0, %v337_v33 }
  0x3e   : > { %913 = vmatpush.bf16.msra.mxu2 %v2146_v36  ;;  %938 = vmatpush.bf16.msra.mxu3 %v2148_v40 }
  0x40   : > { %864 = vmatpush.bf16.msra.mxu0 %v2141_v38  ;;  %889 = vmatpush.bf16.msra.mxu1 %v2143_v39 }
  0x42   : > { %914 = vmatpush.bf16.msra.mxu2 %v2145_v37  ;;  %939 = vmatpush.bf16.msra.mxu3 %v2147_v42 }
  0x4b   : > { %1981 = vmatmul.msk.bf16.vlgmr.msrb.gmra.mxu0 %vm383_vm0, %v337_v33  ;;  %1990 = vmatmul.msk.bf16.vlgmr.msrb.gmra.mxu1 %vm383_vm0, %v337_v33 }
  0x4c   : > { %963 = vmatpush.bf16.msrb.mxu0 %v2150_v43  ;;  %988 = vmatpush.bf16.msrb.mxu1 %v2152_v44 }
  0x4d   : > { %1999 = vmatmul.msk.bf16.vlgmr.msrb.gmra.mxu2 %vm383_vm0, %v337_v33  ;;  %2008 = vmatmul.msk.bf16.vlgmr.msrb.gmra.mxu3 %vm383_vm0, %v337_v33 }
  0x4e   : > { %1013 = vmatpush.bf16.msrb.mxu2 %v2154_v45  ;;  %1038 = vmatpush.bf16.msrb.mxu3 %v2156_v49 }
  0x50   : > { %964 = vmatpush.bf16.msrb.mxu0 %v2149_v47  ;;  %989 = vmatpush.bf16.msrb.mxu1 %v2151_v48 }
  0x52   : > { %1014 = vmatpush.bf16.msrb.mxu2 %v2153_v46  ;;  %1039 = vmatpush.bf16.msrb.mxu3 %v2155_v50 }
  0x5b   : > { %2017 = vmatmul.msk.bf16.vlgmr.msra.gmra.mxu0 %vm383_vm0, %v338_v41  ;;  %2026 = vmatmul.msk.bf16.vlgmr.msra.gmra.mxu1 %vm383_vm0, %v338_v41 }
  0x5d   : > { %2035 = vmatmul.msk.bf16.vlgmr.msra.gmra.mxu2 %vm383_vm0, %v338_v41  ;;  %2044 = vmatmul.msk.bf16.vlgmr.msra.gmra.mxu3 %vm383_vm0, %v338_v41 }
  0x6b   : > { %2053 = vmatmul.msk.bf16.vlgmr.msrb.gmra.mxu0 %vm383_vm0, %v338_v41  ;;  %2062 = vmatmul.msk.bf16.vlgmr.msrb.gmra.mxu1 %vm383_vm0, %v338_v41 }
  0x6d   : > { %2071 = vmatmul.msk.bf16.vlgmr.msrb.gmra.mxu2 %vm383_vm0, %v338_v41  ;;  %2080 = vmatmul.msk.bf16.vlgmr.msrb.gmra.mxu3 %vm383_vm0, %v338_v41 }
  0x98   : > { %v396_v51 = vpop.f32.mrf.mxu0  ;;  %v421_v52 = vpop.f32.mrf.mxu1 }
  0x99   : > { %v1045_v15 = vpack.c.bf16 %v396_v51, %v396_v51  ;;  %v1046_v16 = vpack.c.bf16 %v421_v52, %v421_v52 }
  0xa0   : > { %v446_v53 = vpop.f32.mrf.mxu2  ;;  %v471_v54 = vpop.f32.mrf.mxu3 }
  0xa1   : > { %v398_v55 = vpop.f32.mrf.mxu0  ;;  %v423_v56 = vpop.f32.mrf.mxu1  ;;  %v1047_v21 = vpack.c.bf16 %v446_v53, %v446_v53  ;;  %v1048_v22 = vpack.c.bf16 %v471_v54, %v471_v54 }
  0xa8   : > { %v448_v57 = vpop.f32.mrf.mxu2  ;;  %v473_v58 = vpop.f32.mrf.mxu3 }
  0xa9   : > { %v496_v59 = vpop.f32.mrf.mxu0  ;;  %v521_v60 = vpop.f32.mrf.mxu1 }
  0xaa   : > { %v1049_v35 = vpack.c.bf16 %v496_v59, %v496_v59  ;;  %v1050_v36 = vpack.c.bf16 %v521_v60, %v521_v60 }
  0xb0   : > { %v546_v61 = vpop.f32.mrf.mxu2  ;;  %v571_v62 = vpop.f32.mrf.mxu3 }
  0xb1   : > { %v498_v63 = vpop.f32.mrf.mxu0  ;;  %v523_v0 = vpop.f32.mrf.mxu1  ;;  %v1051_v41 = vpack.c.bf16 %v546_v61, %v546_v61  ;;  %v1052_v42 = vpack.c.bf16 %v571_v62, %v571_v62 }
  0xb8   : > { %v548_v1 = vpop.f32.mrf.mxu2  ;;  %v573_v2 = vpop.f32.mrf.mxu3 }
  0xb9   : > { %v631_v3 = vpop.f32.mrf.mxu0  ;;  %v656_v4 = vpop.f32.mrf.mxu1 }
  0xba   : > { %v1053_v5 = vpack.c.bf16 %v631_v3, %v631_v3  ;;  %v1054_v6 = vpack.c.bf16 %v656_v4, %v656_v4 }
  0xbc   : > { %v1066_v7 = vsel %vm1061_vm1, %v1053_v5, 0  ;;  %v1085_v8 = vsel %vm1061_vm1, %v1054_v6, 0 }
  0xbd   : > { %1075 = vmatpush.bf16.xpose.msra.mxu0 %v1066_v7  ;;  %1094 = vmatpush.bf16.xpose.msra.mxu1 %v1085_v8 }
  0xc0   : > { %v681_v9 = vpop.f32.mrf.mxu2  ;;  %v706_v10 = vpop.f32.mrf.mxu3 }
  0xc1   : > { %v1055_v11 = vpack.c.bf16 %v681_v9, %v681_v9  ;;  %v1056_v12 = vpack.c.bf16 %v706_v10, %v706_v10  ;;  %v633_v13 = vpop.f32.mrf.mxu0  ;;  %v658_v14 = vpop.f32.mrf.mxu1 }
  0xc3   : > { %v1104_v17 = vsel %vm1061_vm1, %v1055_v11, 0  ;;  %v1123_v18 = vsel %vm1061_vm1, %v1056_v12, 0 }
  0xc4   : > { %1113 = vmatpush.bf16.xpose.msra.mxu2 %v1104_v17  ;;  %1132 = vmatpush.bf16.xpose.msra.mxu3 %v1123_v18 }
  0xc5   : > { %2081 = vmatmul.msk.bf16.vlgmr.msra.gmra.mxu0 %vm1061_vm1, %v1045_v15  ;;  %2082 = vmatmul.msk.bf16.vlgmr.msra.gmra.mxu1 %vm1061_vm1, %v1046_v16 }
  0xc8   : > { %v683_v19 = vpop.f32.mrf.mxu2  ;;  %v708_v20 = vpop.f32.mrf.mxu3 }
  0xc9   : > { %v731_v23 = vpop.f32.mrf.mxu0  ;;  %v756_v24 = vpop.f32.mrf.mxu1 }
  0xca   : > { %v1057_v25 = vpack.c.bf16 %v731_v23, %v731_v23  ;;  %v1058_v26 = vpack.c.bf16 %v756_v24, %v756_v24 }
  0xcb   : > { %2083 = vmatmul.msk.bf16.vlgmr.msra.gmra.mxu2 %vm1061_vm1, %v1047_v21  ;;  %2084 = vmatmul.msk.bf16.vlgmr.msra.gmra.mxu3 %vm1061_vm1, %v1048_v22 }
  0xcc   : > { %v1142_v27 = vsel %vm1061_vm1, %v1057_v25, 0  ;;  %v1161_v28 = vsel %vm1061_vm1, %v1058_v26, 0 }
  0xcd   : > { %1151 = vmatpush.bf16.xpose.msrb.mxu0 %v1142_v27  ;;  %1170 = vmatpush.bf16.xpose.msrb.mxu1 %v1161_v28 }
  0xd0   : > { %v781_v29 = vpop.f32.mrf.mxu2  ;;  %v806_v30 = vpop.f32.mrf.mxu3 }
  0xd1   : > { %v1059_v31 = vpack.c.bf16 %v781_v29, %v781_v29  ;;  %v1060_v32 = vpack.c.bf16 %v806_v30, %v806_v30  ;;  %v733_v33 = vpop.f32.mrf.mxu0  ;;  %v758_v34 = vpop.f32.mrf.mxu1 }
  0xd3   : > { %v1180_v37 = vsel %vm1061_vm1, %v1059_v31, 0  ;;  %v1199_v38 = vsel %vm1061_vm1, %v1060_v32, 0 }
  0xd4   : > { %1189 = vmatpush.bf16.xpose.msrb.mxu2 %v1180_v37  ;;  %1208 = vmatpush.bf16.xpose.msrb.mxu3 %v1199_v38 }
  0xd5   : > { %2085 = vmatmul.msk.bf16.vlgmr.msrb.gmra.mxu0 %vm1061_vm1, %v1049_v35  ;;  %2086 = vmatmul.msk.bf16.vlgmr.msrb.gmra.mxu1 %vm1061_vm1, %v1050_v36 }
  0xd8   : > { %v783_v39 = vpop.f32.mrf.mxu2  ;;  %v808_v40 = vpop.f32.mrf.mxu3 }
  0xd9   : > { %v866_v43 = vpop.f32.mrf.mxu0  ;;  %v891_v44 = vpop.f32.mrf.mxu1 }
  0xda   : > { %v1415_v45 = vpack.c.bf16 %v866_v43, %v866_v43  ;;  %v1416_v46 = vpack.c.bf16 %v891_v44, %v891_v44 }
  0xdb   : > { %2087 = vmatmul.msk.bf16.vlgmr.msrb.gmra.mxu2 %vm1061_vm1, %v1051_v41  ;;  %2088 = vmatmul.msk.bf16.vlgmr.msrb.gmra.mxu3 %vm1061_vm1, %v1052_v42 }
  0xdc   : > { %v1428_v47 = vsel %vm1426_vm2, %v1415_v45, 0  ;;  %v1447_v48 = vsel %vm1426_vm2, %v1416_v46, 0 }
  0xdd   : > { %1437 = vmatpush.bf16.msra.mxu0 %v1428_v47  ;;  %1456 = vmatpush.bf16.msra.mxu1 %v1447_v48 }
  0xe0   : > { %v916_v49 = vpop.f32.mrf.mxu2  ;;  %v941_v54 = vpop.f32.mrf.mxu3 }
  0xe1   : > { %v1417_v50 = vpack.c.bf16 %v916_v49, %v916_v49  ;;  %v868_v51 = vpop.f32.mrf.mxu0  ;;  %v893_v52 = vpop.f32.mrf.mxu1  ;;  %v1418_v55 = vpack.c.bf16 %v941_v54, %v941_v54 }
  0xe3   : > { %v1466_v53 = vsel %vm1426_vm2, %v1417_v50, 0  ;;  %v1485_v57 = vsel %vm1426_vm2, %v1418_v55, 0 }
  0xe4   : > { %1475 = vmatpush.bf16.msra.mxu2 %v1466_v53  ;;  %1494 = vmatpush.bf16.msra.mxu3 %v1485_v57 }
  0xe8   : > { %v918_v56 = vpop.f32.mrf.mxu2  ;;  %v943_v0 = vpop.f32.mrf.mxu3 }
  0xe9   : > { %v966_v58 = vpop.f32.mrf.mxu0  ;;  %v991_v59 = vpop.f32.mrf.mxu1 }
  0xea   : > { %v1419_v60 = vpack.c.bf16 %v966_v58, %v966_v58  ;;  %v1420_v61 = vpack.c.bf16 %v991_v59, %v991_v59 }
  0xec   : > { %v1504_v62 = vsel %vm1426_vm2, %v1419_v60, 0  ;;  %v1523_v63 = vsel %vm1426_vm2, %v1420_v61, 0 }
  0xed   : > { %1513 = vmatpush.bf16.msrb.mxu0 %v1504_v62  ;;  %1532 = vmatpush.bf16.msrb.mxu1 %v1523_v63 }
  0xf0   : > { %v1016_v1 = vpop.f32.mrf.mxu2  ;;  %v1041_v6 = vpop.f32.mrf.mxu3 }
  0xf1   : > { %v1421_v2 = vpack.c.bf16 %v1016_v1, %v1016_v1  ;;  %v968_v3 = vpop.f32.mrf.mxu0  ;;  %v993_v4 = vpop.f32.mrf.mxu1  ;;  %v1422_v7 = vpack.c.bf16 %v1041_v6, %v1041_v6 }
  0xf3   : > { %v1542_v5 = vsel %vm1426_vm2, %v1421_v2, 0  ;;  %v1561_v9 = vsel %vm1426_vm2, %v1422_v7, 0 }
  0xf4   : > { %1551 = vmatpush.bf16.msrb.mxu2 %v1542_v5  ;;  %1570 = vmatpush.bf16.msrb.mxu3 %v1561_v9 }
  0xf8   : > { %v1018_v8 = vpop.f32.mrf.mxu2  ;;  %v1043_v10 = vpop.f32.mrf.mxu3 }
 0x142   : > { %v1077_v11 = vpop.f32.mrf.mxu0  ;;  %v1096_v12 = vpop.f32.mrf.mxu1 }
 0x143   : > { %v1215_v13 = vsel %vm1214_vm3, %v1077_v11, -inf  ;;  %v1218_v16 = vsel %vm1214_vm3, %v1096_v12, -inf }
 0x144   : > { %1216 = vmax.xlane.f32.xlu1 %v1215_v13 }
 0x14a   : > { %v1079_v14 = vpop.f32.mrf.mxu0  ;;  %v1098_v15 = vpop.f32.mrf.mxu1 }
 0x14c   : > { %1219 = vmax.xlane.f32.xlu1 %v1218_v16 }
 0x14e   : > { %v1115_v17 = vpop.f32.mrf.mxu2  ;;  %v1134_v18 = vpop.f32.mrf.mxu3 }
 0x14f   : > { %v1221_v19 = vsel %vm1214_vm3, %v1115_v17, -inf  ;;  %v1224_v25 = vsel %vm1214_vm3, %v1134_v18, -inf }
 0x150   : > { %1222 = vmax.xlane.f32.xlu0 %v1221_v19 }
 0x152   : > { %v1153_v20 = vpop.f32.mrf.mxu0  ;;  %v1172_v21 = vpop.f32.mrf.mxu1 }
 0x153   : > { %v1230_v22 = vsel %vm1214_vm3, %v1172_v21, -inf  ;;  %v1227_v31 = vsel %vm1214_vm3, %v1153_v20, -inf }
 0x154   : > { %1231 = vmax.xlane.f32.xlu1 %v1230_v22 }
 0x156   : > { %v1117_v23 = vpop.f32.mrf.mxu2  ;;  %v1136_v24 = vpop.f32.mrf.mxu3 }
 0x158   : > { %1225 = vmax.xlane.f32.xlu0 %v1224_v25 }
 0x15a   : > { %v1155_v26 = vpop.f32.mrf.mxu0  ;;  %v1174_v27 = vpop.f32.mrf.mxu1 }
 0x15e   : > { %v1191_v28 = vpop.f32.mrf.mxu2  ;;  %v1210_v29 = vpop.f32.mrf.mxu3 }
 0x15f   : > { %v1233_v30 = vsel %vm1214_vm3, %v1191_v28, -inf  ;;  %v1236_v34 = vsel %vm1214_vm3, %v1210_v29, -inf }
 0x160   : > { %1234 = vmax.xlane.f32.xlu2 %v1233_v30  ;;  %1228 = vmax.xlane.f32.xlu0 %v1227_v31 }
 0x166   : > { %v1193_v32 = vpop.f32.mrf.mxu2  ;;  %v1212_v33 = vpop.f32.mrf.mxu3 }
 0x168   : > { %1237 = vmax.xlane.f32.xlu2 %v1236_v34 }
 0x1b7   : > { %v1217_v35 = vpop.xlane.xlu1 %1216 }
 0x1b8   : > { %v1239_v36 = vsub.f32 %v1077_v11, %v1217_v35 }
 0x1ba   : > { %v1247_v37 = vmul.f32 1.442695, %v1239_v36 }
 0x1bc   : > { %2197 = vpow2.f32 %v1247_v37 }
 0x1bf   : > { %v1220_v39 = vpop.xlane.xlu1 %1219 }
 0x1c0   : > { %v1240_v43 = vsub.f32 %v1096_v12, %v1220_v39 }
 0x1c2   : > { %v2602_v38 = vpop.eup %2197  ;;  %v1249_v45 = vmul.f32 1.442695, %v1240_v43 }
 0x1c3   : > { %v1223_v40 = vpop.xlane.xlu0 %1222  ;;  %v1263_v41 = vsel %vm1214_vm3, %v2602_v38, 0.0 }
 0x1c4   : > { %v1241_v42 = vsub.f32 %v1115_v17, %v1223_v40  ;;  %1264 = vadd.xlane.f32.xlu1 %v1263_v41 }
 0x1c6   : > { %v1251_v44 = vmul.f32 1.442695, %v1241_v42 }
 0x1c7   : > { %v1232_v51 = vpop.xlane.xlu1 %1231 }
 0x1c8   : > { %2199 = vpow2.f32 %v1251_v44  ;;  %v1244_v58 = vsub.f32 %v1172_v21, %v1232_v51 }
 0x1c9   : > { %2201 = vpow2.f32 %v1249_v45 }
 0x1ca   : > { %v1257_v63 = vmul.f32 1.442695, %v1244_v58 }
 0x1cb   : > { %v1226_v46 = vpop.xlane.xlu0 %1225 }
 0x1cc   : > { %v1242_v47 = vsub.f32 %v1134_v18, %v1226_v46 }
 0x1ce   : > { %v2606_v48 = vpop.eup %2199  ;;  %v1253_v49 = vmul.f32 1.442695, %v1242_v47 }
 0x1cf   : > { %v1269_v50 = vsel %vm1214_vm3, %v2606_v48, 0.0  ;;  %v2610_v54 = vpop.eup %2201 }
 0x1d0   : > { %2203 = vpow2.f32 %v1253_v49  ;;  %1270 = vadd.xlane.f32.xlu2 %v1269_v50  ;;  %v1266_v61 = vsel %vm1214_vm3, %v2610_v54, 0.0 }
 0x1d3   : > { %v1235_v52 = vpop.xlane.xlu2 %1234  ;;  %v1229_v53 = vpop.xlane.xlu0 %1228 }
 0x1d4   : > { %v1245_v55 = vsub.f32 %v1191_v28, %v1235_v52  ;;  %v1243_v56 = vsub.f32 %v1153_v20, %v1229_v53 }
 0x1d6   : > { %v2612_v57 = vpop.eup %2203  ;;  %v1259_v59 = vmul.f32 1.442695, %v1245_v55  ;;  %v1255_v60 = vmul.f32 1.442695, %v1243_v56 }
 0x1d7   : > { %v1272_v62 = vsel %vm1214_vm3, %v2612_v57, 0.0 }
 0x1d8   : > { %2205 = vpow2.f32 %v1259_v59  ;;  %1267 = vadd.xlane.f32.xlu2 %v1266_v61  ;;  %1273 = vadd.xlane.f32.xlu0 %v1272_v62 }
 0x1d9   : > { %2207 = vpow2.f32 %v1255_v60 }
 0x1da   : > { %2209 = vpow2.f32 %v1257_v63 }
 0x1db   : > { %v1238_v0 = vpop.xlane.xlu2 %1237 }
 0x1dc   : > { %v1246_v1 = vsub.f32 %v1210_v29, %v1238_v0 }
 0x1de   : > { %v2618_v2 = vpop.eup %2205  ;;  %v1261_v3 = vmul.f32 1.442695, %v1246_v1 }
 0x1df   : > { %v2620_v4 = vpop.eup %2207  ;;  %v1281_v5 = vsel %vm1214_vm3, %v2618_v2, 0.0 }
 0x1e0   : > { %2211 = vpow2.f32 %v1261_v3  ;;  %1282 = vadd.xlane.f32.xlu0 %v1281_v5  ;;  %v1275_v6 = vsel %vm1214_vm3, %v2620_v4, 0.0  ;;  %v2626_v7 = vpop.eup %2209 }
 0x1e1   : > { %1276 = vadd.xlane.f32.xlu2 %v1275_v6  ;;  %v1278_v10 = vsel %vm1214_vm3, %v2626_v7, 0.0 }
 0x1e6   : > { %v2628_v8 = vpop.eup %2211 }
 0x1e7   : > { %v1284_v9 = vsel %vm1214_vm3, %v2628_v8, 0.0 }
 0x1e8   : > { %1285 = vadd.xlane.f32.xlu1 %v1284_v9  ;;  %1279 = vadd.xlane.f32.xlu0 %v1278_v10 }
 0x237   : > { %v1265_v11 = vpop.xlane.xlu1 %1264 }
 0x238   : > { %2213 = vrcp.f32 %v1265_v11  ;;  %v1298_v15 = vand.u32 2147483648, %v1265_v11  ;;  %v1296_v17 = vand.u32 2147483647, %v1265_v11  ;;  %vm1292_vm5 = vweird.f32 %v1265_v11 }
 0x23a   : > { %v1299_v20 = vor.u32 1.1754944e-38, %v1298_v15  ;;  %vm1297_vm7 = vcmp.eq.f32.partialorder %v1296_v17, 8.507059e+37 }
 0x23e   : > { %v2214_v12 = vpop.eup %2213 }
 0x23f   : > { %v1288_v13 = vmul.f32 %v2214_v12, %v1265_v11  ;;  %vm1293_vm4 = vweird.f32 %v2214_v12 }
 0x240   : > { %vm1294_vm6 = vmor %vm1292_vm5, %vm1293_vm4 }
 0x241   : > { %v1289_v14 = vsub.f32 1.0, %v1288_v13 }
 0x243   : > { %v1290_v16 = vmul.f32 %v2214_v12, %v1289_v14  ;;  %v1271_v18 = vpop.xlane.xlu2 %1270 }
 0x244   : > { %2215 = vrcp.f32 %v1271_v18  ;;  %v1326_v30 = vand.u32 2147483648, %v1271_v18  ;;  %v1324_v32 = vand.u32 2147483647, %v1271_v18  ;;  %vm1320_vm9 = vweird.f32 %v1271_v18 }
 0x245   : > { %v1291_v19 = vadd.f32 %v2214_v12, %v1290_v16 }
 0x246   : > { %v1327_v35 = vor.u32 1.1754944e-38, %v1326_v30  ;;  %vm1325_vm11 = vcmp.eq.f32.partialorder %v1324_v32, 8.507059e+37 }
 0x247   : > { %v1295_v21 = vsel %vm1294_vm6, %v2214_v12, %v1291_v19 }
 0x248   : > { %v1300_v22 = vsel %vm1297_vm7, %v1299_v20, %v1295_v21 }
 0x249   : > { %v1399_v23 = vmul.f32 %v2602_v38, %v1300_v22 }
 0x24a   : > { %v2216_v24 = vpop.eup %2215 }
 0x24b   : > { %v1316_v25 = vmul.f32 %v2216_v24, %v1271_v18  ;;  %v1268_v26 = vpop.xlane.xlu2 %1267  ;;  %v1274_v27 = vpop.xlane.xlu0 %1273  ;;  %v1407_v28 = vpack.c.bf16 %v1399_v23, %v1399_v23  ;;  %vm1321_vm8 = vweird.f32 %v2216_v24 }
 0x24c   : > { %2217 = vrcp.f32 %v1268_v26  ;;  %vm1322_vm10 = vmor %vm1320_vm9, %vm1321_vm8  ;;  %v1310_v45 = vand.u32 2147483647, %v1268_v26  ;;  %v1312_v46 = vand.u32 2147483648, %v1268_v26  ;;  %v1340_v50 = vand.u32 2147483648, %v1274_v27 }
 0x24d   : > { %v1317_v29 = vsub.f32 1.0, %v1316_v25  ;;  %2219 = vrcp.f32 %v1274_v27  ;;  %2089 = vmatmul.msk.bf16.vlgmr.msra.gmra.mxu0 %vm1214_vm3, %v1407_v28  ;;  %v1338_v53 = vand.u32 2147483647, %v1274_v27  ;;  %vm1306_vm14 = vweird.f32 %v1268_v26 }
 0x24e   : > { %vm1334_vm0 = vweird.f32 %v1274_v27  ;;  %vm1311_vm2 = vcmp.eq.f32.partialorder %v1310_v45, 8.507059e+37  ;;  %v1341_v61 = vor.u32 1.1754944e-38, %v1340_v50 }
 0x24f   : > { %v1318_v31 = vmul.f32 %v2216_v24, %v1317_v29  ;;  %vm1339_vm5 = vcmp.eq.f32.partialorder %v1338_v53, 8.507059e+37 }
 0x251   : > { %v1319_v33 = vadd.f32 %v2216_v24, %v1318_v31 }
 0x252   : > { %v2218_v34 = vpop.eup %2217 }
 0x253   : > { %v2220_v36 = vpop.eup %2219  ;;  %v1323_v37 = vsel %vm1322_vm10, %v2216_v24, %v1319_v33  ;;  %v1302_v38 = vmul.f32 %v2218_v34, %v1268_v26  ;;  %v2636_v39 = vpop.xlane.xlu0 %1282  ;;  %vm1307_vm12 = vweird.f32 %v2218_v34 }
 0x254   : > { %v1328_v40 = vsel %vm1325_vm11, %v1327_v35, %v1323_v37  ;;  %v1330_v41 = vmul.f32 %v2220_v36, %v1274_v27  ;;  %v2638_v42 = vpop.xlane.xlu2 %1276  ;;  %2221 = vrcp.f32 %v2636_v39  ;;  %vm1335_vm13 = vweird.f32 %v2220_v36  ;;  %vm1308_vm15 = vmor %vm1306_vm14, %vm1307_vm12 }
 0x255   : > { %v1401_v43 = vmul.f32 %v2606_v48, %v1328_v40  ;;  %v1303_v44 = vsub.f32 1.0, %v1302_v38  ;;  %2223 = vrcp.f32 %v2638_v42  ;;  %v1313_v48 = vor.u32 1.1754944e-38, %v1312_v46  ;;  %vm1336_vm4 = vmor %vm1334_vm0, %vm1335_vm13 }
 0x256   : > { %v1331_v47 = vsub.f32 1.0, %v1330_v41  ;;  %v1354_v13 = vand.u32 2147483648, %v2638_v42  ;;  %v1382_v14 = vand.u32 2147483648, %v2636_v39  ;;  %v1380_v16 = vand.u32 2147483647, %v2636_v39 }
 0x257   : > { %v1304_v49 = vmul.f32 %v2218_v34, %v1303_v44  ;;  %v1409_v51 = vpack.c.bf16 %v1401_v43, %v1401_v43  ;;  %vm1376_vm8 = vweird.f32 %v2636_v39  ;;  %vm1348_vm9 = vweird.f32 %v2638_v42 }
 0x258   : > { %v1332_v52 = vmul.f32 %v2220_v36, %v1331_v47  ;;  %v1383_v21 = vor.u32 1.1754944e-38, %v1382_v14  ;;  %v1355_v23 = vor.u32 1.1754944e-38, %v1354_v13  ;;  %vm1381_vm12 = vcmp.eq.f32.partialorder %v1380_v16, 8.507059e+37 }
 0x259   : > { %v1305_v55 = vadd.f32 %v2218_v34, %v1304_v49  ;;  %2091 = vmatmul.msk.bf16.vlgmr.msra.gmra.mxu2 %vm1214_vm3, %v1409_v51 }
 0x25a   : > { %v2222_v56 = vpop.eup %2221  ;;  %v1333_v58 = vadd.f32 %v2220_v36, %v1332_v52 }
 0x25b   : > { %v2224_v59 = vpop.eup %2223  ;;  %v1309_v60 = vsel %vm1308_vm15, %v2218_v34, %v1305_v55  ;;  %v1372_v62 = vmul.f32 %v2222_v56, %v2636_v39  ;;  %v2645_v63 = vpop.xlane.xlu1 %1285  ;;  %vm1377_vm6 = vweird.f32 %v2222_v56  ;;  %v1584_v55 = vld [vmem:[%s2759_s6] sm:$0x3] }
 0x25c   : > { %v1314_v0 = vsel %vm1311_vm2, %v1313_v48, %v1309_v60  ;;  %v1337_v1 = vsel %vm1336_vm4, %v2220_v36, %v1333_v58  ;;  %v1344_v3 = vmul.f32 %v2224_v59, %v2638_v42  ;;  %v2648_v5 = vpop.xlane.xlu0 %1279  ;;  %2225 = vrcp.f32 %v2645_v63  ;;  %vm1378_vm10 = vmor %vm1376_vm8, %vm1377_vm6 }
 0x25d   : > { %v1400_v6 = vmul.f32 %v2610_v54, %v1314_v0  ;;  %v1342_v9 = vsel %vm1339_vm5, %v1341_v61, %v1337_v1  ;;  %v1373_v10 = vsub.f32 1.0, %v1372_v62  ;;  %2227 = vrcp.f32 %v2648_v5  ;;  %v1588_v61 = vld [vmem:[%s2759_s6 + $0x8] sm:$0x3]  ;;  %v1590_v1 = vld [vmem:[%s2759_s6 + $0xc] sm:$0x3] }
 0x25e   : > { %v1402_v11 = vmul.f32 %v2612_v57, %v1342_v9  ;;  %v1345_v12 = vsub.f32 1.0, %v1344_v3  ;;  %vm1349_vm7 = vweird.f32 %v2224_v59  ;;  %v1352_v54 = vand.u32 2147483647, %v2638_v42 }
 0x25f   : > { %v1374_v15 = vmul.f32 %v2222_v56, %v1373_v10  ;;  %v1408_v19 = vpack.c.bf16 %v1400_v6, %v1400_v6  ;;  %vm1350_vm11 = vmor %vm1348_vm9, %vm1349_vm7  ;;  %v1394_v34 = vand.u32 2147483647, %v2645_v63  ;;  %v1396_v35 = vand.u32 2147483648, %v2645_v63  ;;  %v1591_v10 = vld [vmem:[%s2759_s6 + $0xe] sm:$0x3] }
 0x260   : > { %v1346_v17 = vmul.f32 %v2224_v59, %v1345_v12  ;;  %v1410_v57 = vpack.c.bf16 %v1402_v11, %v1402_v11  ;;  %vm1353_vm13 = vcmp.eq.f32.partialorder %v1352_v54, 8.507059e+37  ;;  %vm1390_vm15 = vweird.f32 %v2645_v63 }
 0x261   : > { %v1375_v18 = vadd.f32 %v2222_v56, %v1374_v15  ;;  %2090 = vmatmul.msk.bf16.vlgmr.msra.gmra.mxu1 %vm1214_vm3, %v1408_v19  ;;  %v1368_v40 = vand.u32 2147483648, %v2648_v5  ;;  %v1366_v41 = vand.u32 2147483647, %v2648_v5  ;;  %v1397_v42 = vor.u32 1.1754944e-38, %v1396_v35 }
 0x262   : > { %v1347_v20 = vadd.f32 %v2224_v59, %v1346_v17  ;;  %v2226_v22 = vpop.eup %2225  ;;  %2092 = vmatmul.msk.bf16.vlgmr.msra.gmra.mxu3 %vm1214_vm3, %v1410_v57  ;;  %vm1395_vm4 = vcmp.eq.f32.partialorder %v1394_v34, 8.507059e+37  ;;  %vm1362_vm5 = vweird.f32 %v2648_v5  ;;  %vm1595_vm8 = vcmask 1041408  }
 0x263   : > { %v1379_v24 = vsel %vm1378_vm10, %v2222_v56, %v1375_v18  ;;  %v1386_v27 = vmul.f32 %v2226_v22, %v2645_v63  ;;  %v2228_v28 = vpop.eup %2227  ;;  %vm1391_vm14 = vweird.f32 %v2226_v22  ;;  %v1369_v46 = vor.u32 1.1754944e-38, %v1368_v40 }
 0x264   : > { %v1351_v25 = vsel %vm1350_vm11, %v2224_v59, %v1347_v20  ;;  %v1384_v26 = vsel %vm1381_vm12, %v1383_v21, %v1379_v24  ;;  %v1358_v33 = vmul.f32 %v2228_v28, %v2648_v5  ;;  %vm1363_vm0 = vweird.f32 %v2228_v28  ;;  %vm1392_vm2 = vmor %vm1390_vm15, %vm1391_vm14  ;;  %v1587_v59 = vld [vmem:[%s2759_s6 + $0x6] sm:$0x3]  ;;  %v1589_v5 = vld [vmem:[%s2759_s6 + $0xa] sm:$0x3] }
 0x265   : > { %v1356_v29 = vsel %vm1353_vm13, %v1355_v23, %v1351_v25  ;;  %v1405_v30 = vmul.f32 %v2618_v2, %v1384_v26  ;;  %v1387_v32 = vsub.f32 1.0, %v1386_v27  ;;  %vm1364_vm6 = vmor %vm1362_vm5, %vm1363_vm0  ;;  %vm1367_vm7 = vcmp.eq.f32.partialorder %v1366_v41, 8.507059e+37 }
 0x266   : > { %v1403_v31 = vmul.f32 %v2620_v4, %v1356_v29  ;;  %v1359_v39 = vsub.f32 1.0, %v1358_v33  ;;  %v1597_v56 = vsel %vm1595_vm8, %v1584_v55, 0  ;;  %v1654_v60 = vsel %vm1595_vm8, %v1587_v59, 0 }
 0x267   : > { %v1413_v36 = vpack.c.bf16 %v1405_v30, %v1405_v30  ;;  %v1388_v38 = vmul.f32 %v2226_v22, %v1387_v32  ;;  %1606 = vmatpush.bf16.msra.mxu0 %v1597_v56  ;;  %1663 = vmatpush.bf16.msra.mxu3 %v1654_v60  ;;  %v1673_v62 = vsel %vm1595_vm8, %v1588_v61, 0  ;;  %v1711_v3 = vsel %vm1595_vm8, %v1590_v1, 0 }
 0x268   : > { %v1411_v37 = vpack.c.bf16 %v1403_v31, %v1403_v31  ;;  %v1360_v4 = vmul.f32 %v2228_v28, %v1359_v39  ;;  %v1692_v6 = vsel %vm1595_vm8, %v1589_v5, 0  ;;  %v1730_v11 = vsel %vm1595_vm8, %v1591_v10, 0 }
 0x269   : > { %2095 = vmatmul.msk.bf16.vlgmr.msrb.gmra.mxu2 %vm1214_vm3, %v1413_v36  ;;  %v1389_v2 = vadd.f32 %v2226_v22, %v1388_v38 }
 0x26a   : > { %2093 = vmatmul.msk.bf16.vlgmr.msrb.gmra.mxu0 %vm1214_vm3, %v1411_v37  ;;  %v1361_v44 = vadd.f32 %v2228_v28, %v1360_v4 }
 0x26b   : > { %v1393_v43 = vsel %vm1392_vm2, %v2226_v22, %v1389_v2  ;;  %1682 = vmatpush.bf16.msrb.mxu0 %v1673_v62 }
 0x26c   : > { %v1398_v45 = vsel %vm1395_vm4, %v1397_v42, %v1393_v43  ;;  %v1365_v49 = vsel %vm1364_vm6, %v2228_v28, %v1361_v44 }
 0x26d   : > { %v1406_v47 = vmul.f32 %v2628_v8, %v1398_v45  ;;  %v1370_v50 = vsel %vm1367_vm7, %v1369_v46, %v1365_v49  ;;  %v1586_v8 = vld [vmem:[%s2759_s6 + $0x4] sm:$0x3] }
 0x26e   : > { %v1404_v52 = vmul.f32 %v2626_v7, %v1370_v50  ;;  %v1635_v48 = vsel %vm1595_vm8, %v1586_v8, 0  ;;  %v1585_v7 = vld [vmem:[%s2759_s6 + $0x2] sm:$0x3]  ;;  %v2196_v50 = vld [vmem:[%s2760_s7] ss:$0 sm:$0xff] }
 0x26f   : > { %v1414_v51 = vpack.c.bf16 %v1406_v47, %v1406_v47  ;;  %1644 = vmatpush.bf16.msra.mxu2 %v1635_v48  ;;  %v1616_v58 = vsel %vm1595_vm8, %v1585_v7, 0 }
 0x270   : > { %v1412_v53 = vpack.c.bf16 %v1404_v52, %v1404_v52  ;;  %1625 = vmatpush.bf16.msra.mxu1 %v1616_v58 }
 0x272   : > { %2096 = vmatmul.msk.bf16.vlgmr.msrb.gmra.mxu3 %vm1214_vm3, %v1414_v51  ;;  %2094 = vmatmul.msk.bf16.vlgmr.msrb.gmra.mxu1 %vm1214_vm3, %v1412_v53 }
 0x273   : > { %1720 = vmatpush.bf16.msrb.mxu2 %v1711_v3  ;;  %1739 = vmatpush.bf16.msrb.mxu3 %v1730_v11 }
 0x274   : > { %1701 = vmatpush.bf16.msrb.mxu1 %v1692_v6 }
 0x2ca   : > { %v1439_v63 = vpop.f32.mrf.mxu0 }
 0x2cb   : > { %v1576_v0 = vpack.c.bf16 %v1439_v63, %v1439_v63 }
 0x2cd   : > { %2097 = vmatmul.msk.bf16.vlgmr.msra.gmra.mxu0 %vm1061_vm1, %v1576_v0 }
 0x2d2   : > { %v1441_v9 = vpop.f32.mrf.mxu0 }
 0x2dc   : > { %v1477_v12 = vpop.f32.mrf.mxu2 }
 0x2dd   : > { %v1578_v13 = vpack.c.bf16 %v1477_v12, %v1477_v12 }
 0x2de   : > { %v1458_v14 = vpop.f32.mrf.mxu1 }
 0x2df   : > { %2099 = vmatmul.msk.bf16.vlgmr.msra.gmra.mxu2 %vm1061_vm1, %v1578_v13  ;;  %v1577_v15 = vpack.c.bf16 %v1458_v14, %v1458_v14 }
 0x2e1   : > { %2098 = vmatmul.msk.bf16.vlgmr.msra.gmra.mxu1 %vm1061_vm1, %v1577_v15 }
 0x2e4   : > { %v1479_v16 = vpop.f32.mrf.mxu2 }
 0x2e5   : > { %v1496_v17 = vpop.f32.mrf.mxu3 }
 0x2e6   : > { %v1579_v54 = vpack.c.bf16 %v1496_v17, %v1496_v17  ;;  %v1460_v19 = vpop.f32.mrf.mxu1 }
 0x2e7   : > { %v1515_v18 = vpop.f32.mrf.mxu0 }
 0x2e8   : > { %v1580_v57 = vpack.c.bf16 %v1515_v18, %v1515_v18  ;;  %2100 = vmatmul.msk.bf16.vlgmr.msra.gmra.mxu3 %vm1061_vm1, %v1579_v54 }
 0x2ea   : > { %2101 = vmatmul.msk.bf16.vlgmr.msrb.gmra.mxu0 %vm1061_vm1, %v1580_v57 }
 0x2ec   : > { %v1553_v20 = vpop.f32.mrf.mxu2 }
 0x2ed   : > { %v1582_v21 = vpack.c.bf16 %v1553_v20, %v1553_v20  ;;  %v1498_v22 = vpop.f32.mrf.mxu3 }
 0x2ef   : > { %v1517_v23 = vpop.f32.mrf.mxu0  ;;  %2103 = vmatmul.msk.bf16.vlgmr.msrb.gmra.mxu2 %vm1061_vm1, %v1582_v21  ;;  %v1534_v24 = vpop.f32.mrf.mxu1 }
 0x2f0   : > { %v1581_v25 = vpack.c.bf16 %v1534_v24, %v1534_v24 }
 0x2f2   : > { %2102 = vmatmul.msk.bf16.vlgmr.msrb.gmra.mxu1 %vm1061_vm1, %v1581_v25 }
 0x2f4   : > { %v1555_v26 = vpop.f32.mrf.mxu2 }
 0x2f5   : > { %v1572_v27 = vpop.f32.mrf.mxu3 }
 0x2f6   : > { %v1583_v28 = vpack.c.bf16 %v1572_v27, %v1572_v27 }
 0x2f7   : > { %v1536_v29 = vpop.f32.mrf.mxu1 }
 0x2f8   : > { %2104 = vmatmul.msk.bf16.vlgmr.msrb.gmra.mxu3 %vm1061_vm1, %v1583_v28 }
 0x2fd   : > { %v1574_v30 = vpop.f32.mrf.mxu3 }
 0x34a   : > { %v1608_v31 = vpop.f32.mrf.mxu0 }
 0x352   : > { %v1610_v32 = vpop.f32.mrf.mxu0 }
 0x35e   : > { %v1627_v33 = vpop.f32.mrf.mxu1 }
 0x35f   : > { %v1745_v39 = vadd.f32 %v1627_v33, %v1608_v31 }
 0x362   : > { %v1646_v34 = vpop.f32.mrf.mxu2 }
 0x363   : > { %v1746_v40 = vadd.f32 %v1745_v39, %v1646_v34 }
 0x366   : > { %v1629_v36 = vpop.f32.mrf.mxu1 }
 0x367   : > { %v1684_v35 = vpop.f32.mrf.mxu0 }
 0x36a   : > { %v1648_v37 = vpop.f32.mrf.mxu2 }
 0x36b   : > { %v1665_v38 = vpop.f32.mrf.mxu3 }
 0x36c   : > { %v1747_v4 = vadd.f32 %v1746_v40, %v1665_v38 }
 0x36e   : > { %v1748_v44 = vadd.f32 %v1747_v4, %v1684_v35 }
 0x36f   : > { %v1686_v2 = vpop.f32.mrf.mxu0  ;;  %v1703_v41 = vpop.f32.mrf.mxu1 }
 0x370   : > { %v1749_v45 = vadd.f32 %v1748_v44, %v1703_v41 }
 0x372   : > { %v1722_v42 = vpop.f32.mrf.mxu2 }
 0x373   : > { %v1667_v43 = vpop.f32.mrf.mxu3  ;;  %v1750_v49 = vadd.f32 %v1749_v45, %v1722_v42 }
 0x377   : > { %v1705_v46 = vpop.f32.mrf.mxu1 }
 0x37a   : > { %v1724_v47 = vpop.f32.mrf.mxu2 }
 0x37b   : > { %v1741_v51 = vpop.f32.mrf.mxu3 }
 0x37c   : > { %v1751_v52 = vadd.f32 %v1750_v49, %v1741_v51 }
 0x37e   : > { %v1756_v53 = vadd.f32 %v2196_v50, %v1751_v52 }
 0x380   : > { %1757 = vst [vmem:[%s322_s23] sm:$0xff] %v1756_v53 }
 0x381   : > { %2256 = shalt.err (!%p2253_p3)
}
 0x382   : > { %2157 = dma.vmem_to_hbm [thread:$0]  (%p2376_p5), %s1772_s24, 128, %s1774_s25, %s1759_s9  }
 0x383   : > { %v1743_v55 = vpop.f32.mrf.mxu3 }
 0x384 PF: > { %p2163_p4 = scmp.ge.s32.totalorder %s2291_s30, 2  ;;  %s1785_s12 = sand.u32 1, %s2279_s27  }
 0x385   : > { %s1786_s21 = scalar_lea.sflag [#allocation3], %s1785_s12 }
 0x386   : > { %p2160_p7 = pnand %p2163_p4, %p2380_p6 }
 0x388   : > { %p2161_p8 = pneg %p2160_p7 }
 0x38a   : > { %2274 = dma.done.wait (%p2161_p8), %s1786_s21, 128  }
 0x38b   : > { %2276 = vsyncadd (%p2161_p8), %s1786_s21, 4294967168  ;;  %p18_p9 = scmp.ge.s32.totalorder %s2363_s11, 4   ;;  %s2764_s27 = smov %s2283_s28 }
 0x38c   : > { %s2765_s28 = smov %s2287_s29  ;;  %s2766_s29 = smov %s2374_s14 }
 0x38d   : > { %s2767_s30 = smov %s2363_s11  ;;  %20 = sbr.rel (!%p18_p9) target bundleno = 3 (0x3), region = 93 }
 0x392   :  { %1792 = vsyncpa [#allocation3], 1 }
 0x393   :  { %1794 = vsyncpa [#allocation3 + $0x1], 1 }

</bundles_post_ra>
